<compile_context>
chip_gen: v6e
topology: v6e:2x2x1
jax: 0.10.0
libtpu: 0.0.40
codegen_flags: <defaults>
</compile_context>

<pallas_src>
import functools

import jax
import jax.numpy as jnp
from jax import lax
from jax.experimental import pallas as pl
from jax.experimental.pallas import tpu as pltpu

QN, QP = -8, 7          # signed 4-bit LSQ activation range
NEG_SLOPE = 0.01        # nn.LeakyReLU default
KH = KW = 3             # kernel_size=3, stride=1, padding=1 (block default)
BN_EPS = 1e-5


def lambda_layer(lambd, x):
    """LambdaLayer.forward: a pure pass-through around an arbitrary callable."""
    return lambd(x)


def _block_kernel(inv_s_ref, x_ref, a_ref, scale_ref, bias_ref, o_ref, codes_ref,
                  *, h, w, cin, cout):
    """One batch-block per grid step.

    inv_s_ref : (1,)                 SMEM  1 / LSQ activation step
    x_ref     : (B, H, W*Cin)  f32   VMEM  activations, channels fused into lanes
    a_ref     : (KH, W*Cin, W*Cout)  VMEM  banded block-Toeplitz sign weights (bf16)
    scale_ref : (1, W*Cout)    f32   VMEM  folded per-channel scale (lane-tiled)
    bias_ref  : (1, W*Cout)    f32   VMEM  folded BatchNorm bias   (lane-tiled)
    o_ref     : (B, H, W*Cout) bf16  VMEM  output block (lane-dense, exact bytes)
    codes_ref : (B, H+2, W*Cin) bf16 VMEM  scratch: H-padded activation codes
    """
    bb = x_ref.shape[0]
    hp = h + 2
    inv_s = inv_s_ref[0]

    # LSQ 4-bit activation codes: small exact integers (f32 math, stored bf16).
    # Quantize once; the 3 ky row-shifted views are ref-level static slices below.
    codes = jnp.clip(jnp.round(x_ref[...] * inv_s), QN, QP)
    zero_row = jnp.zeros((bb, 1, w * cin), jnp.bfloat16)
    codes_ref[:, 0:1, :] = zero_row            # top H-pad row (W-pad lives in a_ref)
    codes_ref[:, hp - 1:hp, :] = zero_row      # bottom H-pad row
    codes_ref[:, 1:1 + h, :] = codes.astype(jnp.bfloat16)

    # 3x3 conv = 3 accumulating MXU matmuls: padded code rows (B*H, W*Cin) x banded
    # sign-weight slab (W*Cin, W*Cout).  Exact in bf16 (codes in [-8,7], weights in
    # {-1,0,+1}) with f32 accumulation; W zero-padding = structural zeros in a_ref.
    acc = jnp.zeros((bb * h, w * cout), jnp.float32)
    for ky in range(KH):
        rows = codes_ref[:, ky:ky + h, :].reshape(bb * h, w * cin)
        acc = acc + jnp.dot(rows, a_ref[ky], preferred_element_type=jnp.float32)

    y = acc * scale_ref[...] + bias_ref[...]        # folded LSQ step / IR scale / BN
    y = jnp.where(y >= 0, y, NEG_SLOPE * y)         # LeakyReLU
    o_ref[...] = y.reshape(bb, h, w * cout).astype(o_ref.dtype)


def _banded_sign_weights(weight, w, cin, cout):
    """(KH, W*Cin, W*Cout) block-Toeplitz matrix of weight SIGNS in {-1, 0, +1}.

    A[ky, u*Cin + c, x*Cout + co] = sign(weight[co, c, ky, u - x + 1]) when the tap
    index u - x + 1 lies in [0, KW); structural zeros elsewhere implement the
    stride-1 / pad-1 W zero-padding.
    """
    # TODO(synk): jnp.sign maps exactly-zero weights to 0; some IR-Net impls map 0 -> +1.
    sign_w = jnp.sign(weight)                              # (Cout, Cin, KH, KW)
    s_perm = jnp.transpose(sign_w, (2, 1, 3, 0))           # (KH, Cin, KW, Cout)
    u = jnp.arange(w)[:, None]                             # input column
    x = jnp.arange(w)[None, :]                             # output column
    dx = u - x + 1                                         # tap index kx
    mask = (dx >= 0) & (dx < KW)
    dxc = jnp.clip(dx, 0, KW - 1)
    gathered = s_perm[:, :, dxc, :]                        # (KH, Cin, W, W, Cout)
    gathered = gathered * mask[None, None, :, :, None]
    a = jnp.transpose(gathered, (0, 2, 1, 3, 4))           # (KH, W, Cin, W, Cout)
    return a.reshape(KH, w * cin, w * cout).astype(jnp.bfloat16)


def basic_block_1w4a(x_nchw, weight, gamma, beta, run_mean, run_var, act_step,
                     *, batch_block=None):
    """Forward of the quantized conv block.  Inputs follow PyTorch conventions (NCHW)."""
    n, cin, h, w = x_nchw.shape
    cout = weight.shape[0]
    hp = h + 2

    # Batch blocking: amortize the ~0.35us/grid-step overhead while keeping
    # >= min(8, N) grid steps (>= ~4 per v7x TensorCore for DMA/compute overlap), and
    # cap the per-step footprint far below v5e's 16 MiB default scoped VMEM.
    if batch_block is None:
        per_image = (h * w * cin * 4        # input block, f32 (double buffered)
                     + h * w * cout * 2     # output block, bf16 (double buffered)
                     + hp * w * cin * 2)    # codes scratch, bf16
        vmem_cap = max(1, (8 << 20) // (2 * per_image))
        batch_block = max(1, min(vmem_cap, n // min(8, n)))
    grid_b = pl.cdiv(n, batch_block)
    n_pad = grid_b * batch_block

    # NCHW -> (N, H, W*Cin) with channels fused into lanes; single XLA pass.  Spatial
    # zero-padding now happens inside the kernel / weight matrix, so no jnp.pad here.
    # TODO(synk): a producer handing over NHWC activations would remove this pass too.
    x2 = jnp.transpose(x_nchw, (0, 2, 3, 1)).astype(jnp.float32).reshape(n, h, w * cin)
    if n_pad != n:
        x2 = jnp.pad(x2, ((0, n_pad - n), (0, 0), (0, 0)))

    # IR-Net 1-bit weights: +-1 signs (exact in bf16, banded into the Toeplitz slab)
    # plus per-cout scale mean(|w|), folded with the LSQ step and eval-mode BatchNorm
    # into a single per-channel affine applied after the integer-exact matmuls.
    a_band = _banded_sign_weights(weight, w, cin, cout)
    w_scale = jnp.mean(jnp.abs(weight.reshape(cout, -1)), axis=1)
    bn_scale = gamma / jnp.sqrt(run_var + BN_EPS)
    bn_bias = beta - run_mean * bn_scale
    comb_scale = (act_step * w_scale * bn_scale).astype(jnp.float32)
    scale_lane = jnp.tile(comb_scale, (w,)).reshape(1, w * cout)       # lane = x*Cout+co
    bias_lane = jnp.tile(bn_bias.astype(jnp.float32), (w,)).reshape(1, w * cout)

    inv_s = jnp.reshape(1.0 / act_step, (1,)).astype(jnp.float32)

    kernel = functools.partial(_block_kernel, h=h, w=w, cin=cin, cout=cout)

    out = pl.pallas_call(
        kernel,
        out_shape=jax.ShapeDtypeStruct((n_pad, h, w * cout), jnp.bfloat16),
        grid=(grid_b,),
        in_specs=[
            pl.BlockSpec(memory_space=pltpu.MemorySpace.SMEM),              # 1/act_step
            pl.BlockSpec((batch_block, h, w * cin), lambda i: (i, 0, 0)),   # activations
            pl.BlockSpec((KH, w * cin, w * cout), lambda i: (0, 0, 0)),     # banded signs
            pl.BlockSpec((1, w * cout), lambda i: (0, 0)),                  # folded scale
            pl.BlockSpec((1, w * cout), lambda i: (0, 0)),                  # folded bias
        ],
        out_specs=pl.BlockSpec((batch_block, h, w * cout), lambda i: (i, 0, 0)),
        scratch_shapes=[pltpu.VMEM((batch_block, hp, w * cin), jnp.bfloat16)],
        compiler_params=pltpu.CompilerParams(dimension_semantics=("parallel",)),
    )(inv_s, x2, a_band, scale_lane, bias_lane)

    # (N, H, W*Cout) bf16 -> NCHW f32: the only wrapper pass over the exact-size output.
    # TODO(synk): return NHWC / bf16 directly if the downstream consumer accepts it.
    out = out[:n].reshape(n, h, w, cout).astype(jnp.float32)
    return jnp.transpose(out, (0, 3, 1, 2))


def _reference(x_nchw, weight, gamma, beta, run_mean, run_var, act_step):
    """Pure-JAX reference (same quantizer semantics) for sanity checking."""
    cout = weight.shape[0]
    w_scale = jnp.mean(jnp.abs(weight.reshape(cout, -1)), axis=1)
    w_bin = jnp.sign(weight) * w_scale[:, None, None, None]
    s = act_step
    xq = jnp.clip(jnp.round(x_nchw / s), QN, QP) * s
    y = lax.conv_general_dilated(
        xq, w_bin, window_strides=(1, 1), padding=((1, 1), (1, 1)),
        dimension_numbers=("NCHW", "OIHW", "NCHW"),
        preferred_element_type=jnp.float32)
    bn_scale = gamma / jnp.sqrt(run_var + BN_EPS)
    bn_bias = beta - run_mean * bn_scale
    y = y * bn_scale[None, :, None, None] + bn_bias[None, :, None, None]
    return jnp.where(y >= 0, y, NEG_SLOPE * y)


if __name__ == "__main__":
    key = jax.random.PRNGKey(0)
    k1, k2, k3, k4 = jax.random.split(key, 4)

    N, CIN, H, W = 2, 4, 16, 16
    COUT = 8  # planes

    x = jax.random.normal(k1, (N, CIN, H, W), jnp.float32)
    weight = jax.random.normal(k2, (COUT, CIN, KH, KW), jnp.float32) * 0.1
    gamma = jax.random.uniform(k3, (COUT,), jnp.float32, minval=0.5, maxval=1.5)
    beta = jax.random.normal(k4, (COUT,), jnp.float32) * 0.1
    run_mean = jnp.zeros((COUT,), jnp.float32)
    run_var = jnp.ones((COUT,), jnp.float32)
    act_step = jnp.float32(0.1)

    block = functools.partial(basic_block_1w4a, weight=weight, gamma=gamma, beta=beta,
                              run_mean=run_mean, run_var=run_var, act_step=act_step)
    out = lambda_layer(block, x)          # LambdaLayer.forward == lambd(x)
    out = jax.block_until_ready(out)

    ref = _reference(x, weight, gamma, beta, run_mean, run_var, act_step)
    assert out.shape == (N, COUT, H, W)
    err = float(jnp.max(jnp.abs(out - ref)))
    # Kernel writes bf16 to HBM (perf-review item); quantized matmul itself is exact.
    assert jnp.allclose(out, ref, atol=3e-2, rtol=3e-2), err

    print("KERNEL_OK")
</pallas_src>

<mosaic_0001>
module attributes {stable_mosaic.version = 11 : i64} {
  func.func @_block_kernel(%arg0: i32, %arg1: memref<1xf32, #tpu.memory_space<smem>>, %arg2: memref<1x16x64xf32, #tpu.memory_space<vmem>>, %arg3: memref<3x64x128xbf16, #tpu.memory_space<vmem>>, %arg4: memref<1x128xf32, #tpu.memory_space<vmem>>, %arg5: memref<1x128xf32, #tpu.memory_space<vmem>>, %arg6: memref<1x16x128xbf16, #tpu.memory_space<vmem>>, %arg7: memref<1x18x64xbf16, #tpu.memory_space<vmem>>) attributes {dimension_semantics = [#tpu.dimension_semantics<parallel>], iteration_bounds = array<i64: 2>, scalar_prefetch = 0 : i64, scratch_operands = 1 : i64, tpu.core_type = #tpu.core_type<tc>, window_params = [{transform_indices = @transform_0, window_bounds = array<i64: 1>}, {transform_indices = @transform_1, window_bounds = array<i64: 1, 16, 64>}, {pipeline_mode = #tpu.pipeline_mode<synchronous>, transform_indices = @transform_2, window_bounds = array<i64: 3, 64, 128>}, {pipeline_mode = #tpu.pipeline_mode<synchronous>, transform_indices = @transform_3, window_bounds = array<i64: 1, 128>}, {pipeline_mode = #tpu.pipeline_mode<synchronous>, transform_indices = @transform_4, window_bounds = array<i64: 1, 128>}, {transform_indices = @transform_5, window_bounds = array<i64: 1, 16, 128>}]} {
    %c0 = arith.constant 0 : index
    %0 = memref.load %arg1[%c0] : memref<1xf32, #tpu.memory_space<smem>>
    %c0_0 = arith.constant 0 : index
    %c0_1 = arith.constant 0 : index
    %c0_2 = arith.constant 0 : index
    %1 = vector.load %arg2[%c0_0, %c0_1, %c0_2] : memref<1x16x64xf32, #tpu.memory_space<vmem>>, vector<1x16x64xf32>
    %2 = vector.broadcast %0 : f32 to vector<1x16x64xf32>
    %3 = arith.mulf %1, %2 : vector<1x16x64xf32>
    %4 = math.roundeven %3 : vector<1x16x64xf32>
    %c-8_i32 = arith.constant -8 : i32
    %c7_i32 = arith.constant 7 : i32
    %5 = arith.sitofp %c-8_i32 : i32 to f32
    %6 = vector.broadcast %5 : f32 to vector<1x16x64xf32>
    %7 = arith.maximumf %6, %4 : vector<1x16x64xf32>
    %8 = arith.sitofp %c7_i32 : i32 to f32
    %9 = vector.broadcast %8 : f32 to vector<1x16x64xf32>
    %10 = arith.minimumf %9, %7 : vector<1x16x64xf32>
    %cst = arith.constant 0.000000e+00 : bf16
    %11 = vector.broadcast %cst : bf16 to vector<1x1x64xbf16>
    %c0_3 = arith.constant 0 : index
    %c0_4 = arith.constant 0 : index
    %c0_5 = arith.constant 0 : index
    %12 = vector.load %arg7[%c0_3, %c0_4, %c0_5] : memref<1x18x64xbf16, #tpu.memory_space<vmem>>, vector<1x1x64xbf16>
    tpu.vector_store %arg7[%c0_3, %c0_4, %c0_5], %11 {strides = array<i32>} : memref<1x18x64xbf16, #tpu.memory_space<vmem>>, vector<1x1x64xbf16>,
    %c0_6 = arith.constant 0 : index
    %c17 = arith.constant 17 : index
    %c0_7 = arith.constant 0 : index
    %13 = vector.load %arg7[%c0_6, %c17, %c0_7] : memref<1x18x64xbf16, #tpu.memory_space<vmem>>, vector<1x1x64xbf16>
    tpu.vector_store %arg7[%c0_6, %c17, %c0_7], %11 {strides = array<i32>} : memref<1x18x64xbf16, #tpu.memory_space<vmem>>, vector<1x1x64xbf16>,
    %14 = arith.truncf %10 : vector<1x16x64xf32> to vector<1x16x64xbf16>
    %c0_8 = arith.constant 0 : index
    %c1 = arith.constant 1 : index
    %c0_9 = arith.constant 0 : index
    %15 = vector.load %arg7[%c0_8, %c1, %c0_9] : memref<1x18x64xbf16, #tpu.memory_space<vmem>>, vector<1x16x64xbf16>
    tpu.vector_store %arg7[%c0_8, %c1, %c0_9], %14 {strides = array<i32>} : memref<1x18x64xbf16, #tpu.memory_space<vmem>>, vector<1x16x64xbf16>,
    %cst_10 = arith.constant 0.000000e+00 : f32
    %16 = vector.broadcast %cst_10 : f32 to vector<16x128xf32>
    %c0_11 = arith.constant 0 : index
    %c0_12 = arith.constant 0 : index
    %c0_13 = arith.constant 0 : index
    %17 = vector.load %arg7[%c0_11, %c0_12, %c0_13] : memref<1x18x64xbf16, #tpu.memory_space<vmem>>, vector<1x16x64xbf16>
    %18 = vector.shape_cast %17 : vector<1x16x64xbf16> to vector<16x64xbf16>
    %c0_14 = arith.constant 0 : index
    %c0_15 = arith.constant 0 : index
    %c0_16 = arith.constant 0 : index
    %19 = vector.load %arg3[%c0_14, %c0_15, %c0_16] : memref<3x64x128xbf16, #tpu.memory_space<vmem>>, vector<1x64x128xbf16>
    %20 = vector.shape_cast %19 : vector<1x64x128xbf16> to vector<64x128xbf16>
    %cst_17 = arith.constant dense<0.000000e+00> : vector<16x128xf32>
    %21 = tpu.matmul %18, %20, %cst_17 {dimension_numbers = #tpu.dot_dimension_numbers<[1], [0], [0], [1], [0, 0, 1, 1], [], []>} : vector<16x64xbf16>, vector<64x128xbf16>, vector<16x128xf32> -> vector<16x128xf32>
    %22 = arith.addf %16, %21 : vector<16x128xf32>
    %c0_18 = arith.constant 0 : index
    %c1_19 = arith.constant 1 : index
    %c0_20 = arith.constant 0 : index
    %23 = vector.load %arg7[%c0_18, %c1_19, %c0_20] : memref<1x18x64xbf16, #tpu.memory_space<vmem>>, vector<1x16x64xbf16>
    %24 = vector.shape_cast %23 : vector<1x16x64xbf16> to vector<16x64xbf16>
    %c1_21 = arith.constant 1 : index
    %c0_22 = arith.constant 0 : index
    %c0_23 = arith.constant 0 : index
    %25 = vector.load %arg3[%c1_21, %c0_22, %c0_23] : memref<3x64x128xbf16, #tpu.memory_space<vmem>>, vector<1x64x128xbf16>
    %26 = vector.shape_cast %25 : vector<1x64x128xbf16> to vector<64x128xbf16>
    %cst_24 = arith.constant dense<0.000000e+00> : vector<16x128xf32>
    %27 = tpu.matmul %24, %26, %cst_24 {dimension_numbers = #tpu.dot_dimension_numbers<[1], [0], [0], [1], [0, 0, 1, 1], [], []>} : vector<16x64xbf16>, vector<64x128xbf16>, vector<16x128xf32> -> vector<16x128xf32>
    %28 = arith.addf %22, %27 : vector<16x128xf32>
    %c0_25 = arith.constant 0 : index
    %c2 = arith.constant 2 : index
    %c0_26 = arith.constant 0 : index
    %29 = vector.load %arg7[%c0_25, %c2, %c0_26] : memref<1x18x64xbf16, #tpu.memory_space<vmem>>, vector<1x16x64xbf16>
    %30 = vector.shape_cast %29 : vector<1x16x64xbf16> to vector<16x64xbf16>
    %c2_27 = arith.constant 2 : index
    %c0_28 = arith.constant 0 : index
    %c0_29 = arith.constant 0 : index
    %31 = vector.load %arg3[%c2_27, %c0_28, %c0_29] : memref<3x64x128xbf16, #tpu.memory_space<vmem>>, vector<1x64x128xbf16>
    %32 = vector.shape_cast %31 : vector<1x64x128xbf16> to vector<64x128xbf16>
    %cst_30 = arith.constant dense<0.000000e+00> : vector<16x128xf32>
    %33 = tpu.matmul %30, %32, %cst_30 {dimension_numbers = #tpu.dot_dimension_numbers<[1], [0], [0], [1], [0, 0, 1, 1], [], []>} : vector<16x64xbf16>, vector<64x128xbf16>, vector<16x128xf32> -> vector<16x128xf32>
    %34 = arith.addf %28, %33 : vector<16x128xf32>
    %c0_31 = arith.constant 0 : index
    %c0_32 = arith.constant 0 : index
    %35 = vector.load %arg4[%c0_31, %c0_32] : memref<1x128xf32, #tpu.memory_space<vmem>>, vector<1x128xf32>
    %36 = vector.broadcast %35 : vector<1x128xf32> to vector<16x128xf32>
    %37 = arith.mulf %34, %36 : vector<16x128xf32>
    %c0_33 = arith.constant 0 : index
    %c0_34 = arith.constant 0 : index
    %38 = vector.load %arg5[%c0_33, %c0_34] : memref<1x128xf32, #tpu.memory_space<vmem>>, vector<1x128xf32>
    %39 = vector.broadcast %38 : vector<1x128xf32> to vector<16x128xf32>
    %40 = arith.addf %37, %39 : vector<16x128xf32>
    %cst_35 = arith.constant 0.000000e+00 : f32
    %41 = vector.broadcast %cst_35 : f32 to vector<16x128xf32>
    %42 = arith.cmpf oge, %40, %41 : vector<16x128xf32>
    %cst_36 = arith.constant 0.00999999977 : f32
    %43 = vector.broadcast %cst_36 : f32 to vector<16x128xf32>
    %44 = arith.mulf %43, %40 : vector<16x128xf32>
    %45 = arith.select %42, %40, %44 : vector<16x128xi1>, vector<16x128xf32>
    %46 = vector.shape_cast %45 : vector<16x128xf32> to vector<1x16x128xf32>
    %47 = arith.truncf %46 : vector<1x16x128xf32> to vector<1x16x128xbf16>
    %c0_37 = arith.constant 0 : index
    %c0_38 = arith.constant 0 : index
    %c0_39 = arith.constant 0 : index
    %48 = vector.load %arg6[%c0_37, %c0_38, %c0_39] : memref<1x16x128xbf16, #tpu.memory_space<vmem>>, vector<1x16x128xbf16>
    tpu.vector_store %arg6[%c0_37, %c0_38, %c0_39], %47 {strides = array<i32>} : memref<1x16x128xbf16, #tpu.memory_space<vmem>>, vector<1x16x128xbf16>,
    return
  }
  func.func @transform_0(%arg0: i32) -> i32 {
    %c0_i32 = arith.constant 0 : i32
    %c0_i32_0 = arith.constant 0 : i32
    return %c0_i32 : i32
  }
  func.func @transform_1(%arg0: i32) -> (i32, i32, i32) {
    %c0_i32 = arith.constant 0 : i32
    %c0_i32_0 = arith.constant 0 : i32
    %c0_i32_1 = arith.constant 0 : i32
    return %arg0, %c0_i32, %c0_i32_0 : i32, i32, i32
  }
  func.func @transform_2(%arg0: i32) -> (i32, i32, i32) {
    %c0_i32 = arith.constant 0 : i32
    %c0_i32_0 = arith.constant 0 : i32
    %c0_i32_1 = arith.constant 0 : i32
    %c0_i32_2 = arith.constant 0 : i32
    return %c0_i32, %c0_i32_0, %c0_i32_1 : i32, i32, i32
  }
  func.func @transform_3(%arg0: i32) -> (i32, i32) {
    %c0_i32 = arith.constant 0 : i32
    %c0_i32_0 = arith.constant 0 : i32
    %c0_i32_1 = arith.constant 0 : i32
    return %c0_i32, %c0_i32_0 : i32, i32
  }
  func.func @transform_4(%arg0: i32) -> (i32, i32) {
    %c0_i32 = arith.constant 0 : i32
    %c0_i32_0 = arith.constant 0 : i32
    %c0_i32_1 = arith.constant 0 : i32
    return %c0_i32, %c0_i32_0 : i32, i32
  }
  func.func @transform_5(%arg0: i32) -> (i32, i32, i32) {
    %c0_i32 = arith.constant 0 : i32
    %c0_i32_0 = arith.constant 0 : i32
    %c0_i32_1 = arith.constant 0 : i32
    return %arg0, %c0_i32, %c0_i32_0 : i32, i32, i32
  }
}

</mosaic_0001>

<bundles_post_ra>
// kernel: tpu_custom_call.1
= control target key start
LH: loop header
LB: loop body
LE: loop exit
PB: predicated region body
PF: predicated region fallthrough
CT: control target
= control target key end

     0   :  { %s1311_s0 = inlined_call_operand.<no memory space> [shape: f32[1], index: 0, kind: input, shape index: {}]   ;;  %s1312_s1 = inlined_call_operand.hbm [shape: f32[2,16,64], index: 1, kind: input, shape index: {}]   ;;  %s1313_s2 = inlined_call_operand.hbm [shape: bf16[3,64,128], index: 2, kind: input, shape index: {}]   ;;  %s1314_s3 = inlined_call_operand.vmem [shape: f32[1,128], index: 3, kind: input, shape index: {}]   ;;  %s1315_s4 = inlined_call_operand.vmem [shape: f32[1,128], index: 4, kind: input, shape index: {}]   ;;  %s1316_s5 = inlined_call_operand.hbm [shape: bf16[2,16,128], index: 5, kind: output, shape index: {}]  }
   0x1   :  { %10 = sst [smem:[#allocation3]] %s1311_s0 }
   0x2   :  { %11 = vsyncpa [#allocation5], 0 }
   0x3   :  { %13 = vsyncpa [#allocation5 + $0x1], 0 }
   0x4   :  { %14 = vsyncpa [#allocation8], 0 }
   0x5   :  { %15 = vsyncpa [#allocation6], 0 }
   0x6   :  { %17 = vsyncpa [#allocation6 + $0x1], 0  ;;  %s1082_s20 = smov 0   ;;  %s1084_s21 = smov 0  }
   0x7   :  { %s1086_s22 = smov 0   ;;  %s1088_s23 = smov 0  }
   0x8 LB: > { %s1103_s0 = sadd.s32 4294967295, %s1036_s23   ;;  %s716_s24 = sadd.s32 4294967294, %s1036_s23   ;;  %s1036_s23 = sphi %s1088_s23, %s1342_s23   ;;  %s1032_s22 = sphi %s1086_s22, %s1341_s22   ;;  %s1028_s21 = sphi %s1084_s21, %s1340_s21   ;;  %s1024_s20 = sphi %s1082_s20, %s1339_s20  }
   0x9   : > { %p64_p0 = scmp.ne.s32.totalorder %s1028_s21, %s1024_s20  ;;  %p1317_p1 = scmp.eq.s32.totalorder %s1103_s0, 0 }
   0xa   : > { %p157_p3 = scmp.eq.s32.totalorder %s716_s24, 1  ;;  %p717_p5 = scmp.ge.s32.totalorder %s1036_s23, 1 }
   0xb   : > { %p1112_p4 = por %p1317_p1, %p64_p0  ;;  %p164_p7 = scmp.lt.s32.totalorder %s1036_s23, 3 }
   0xc   : > { %p1117_p6 = por %p157_p3, %p64_p0  ;;  %s1038_s28 = smov [#allocation7]  }
   0xd   : > { %s1321_s25 = scalar_select %p1112_p4, 1, 0 }
   0xe   : > { %s1322_s26 = scalar_select %p1117_p6, 1, 0 }
   0xf   : > { %p1122_p8 = pnand %p717_p5, %p164_p7  ;;  %s179_s29 = sshll.u32 %s1038_s28, 4  ;;  %s180_s29 = int_to_ptr.vmem [resolvable:$true] %s179_s29 }
  0x10   : > { %s1136_s6 = sadd.s32 1, %s1036_s23   ;;  %s51_s7 = sadd.s32 1, %s1032_s22 }
  0x11   : > { %s1323_s27 = scalar_select %p1122_p8, 1, 0 }
  0x12   : > { %p842_p9 = pneg %p1122_p8  ;;  %s48_s8 = ssub.s32 %s1036_s23, %s1136_s6 }
  0x13   : > { %s925_s9 = scalar_lea.vmem %s180_s29, 1536  ;;  %p933_p5 = scmp.lt.s32.totalorder %s180_s29, %s180_s29 }
  0x14   : > { %p1131_p11 = pnand %p842_p9, %p1317_p1  ;;  %p926_p13 = scmp.ne.s32.totalorder %s180_s29, %s925_s9 }
  0x15   : > { %p934_p7 = scmp.lt.s32.totalorder %s925_s9, %s925_s9 }
  0x16   : > { %p916_p12 = pneg %p1131_p11 }
  0x17   : > { %p935_p10 = por %p934_p7, %p933_p5 }
  0x18   : > { %p928_p0 = pnand %p926_p13, %p916_p12 }
  0x1a   : > { %p929_p3 = pneg %p928_p0 }
  0x1c   : > { %p936_p2 = pnand %p935_p10, %p929_p3 }
  0x1e   : > { %939 = shalt.err (!%p936_p2)
}
  0x1f   : > { %s1039_s10 = smov 64   ;;  %s1040_s11 = smov 4  }
  0x20   : > { %845 = dma.hbm_to_vmem [thread:$0]  (!%p1131_p11), %s1313_s2, 1536, %s180_s29, [#allocation8], %s1039_s10, %s1039_s10, %s1040_s11  }
  0x21   : > { %p49_p9 = scmp.eq.s32.totalorder %s48_s8, 0  ;;  %p58_p12 = scmp.ne.s32.totalorder %s1032_s22, %s1028_s21 }
  0x22   : > { %p59_p10 = scmp.eq.s32.totalorder %s1036_s23, 0  ;;  %p855_p2 = scmp.lt.s32.totalorder %s1036_s23, 2 }
  0x23   : > { %s1153_s14 = scalar_select %p49_p9, %s1032_s22, %s51_s7  }
  0x24   : > { %p60_p13 = por %p59_p10, %p58_p12  ;;  %p1325_p0 = scmp.eq.s32.totalorder %s1103_s0, 1 }
  0x25   : > { %s199_s16 = sand.u32 1, %s1032_s22   ;;  %s756_s17 = sshll.u32 %s1036_s23, 8 }
  0x26   : > { %p1157_p3 = por %p1325_p0, %p58_p12  ;;  %s720_s18 = sshll.u32 %s199_s16, 4 }
  0x27   : > { %s1166_s28 = scalar_lea.hbm %s1312_s1, %s756_s17  ;;  %s203_s29 = scalar_lea.vmem [#allocation4], %s720_s18 }
  0x28   : > { %s1326_s15 = scalar_select %p1157_p3, 1, 0 }
  0x29   : > { %s210_s30 = sshll.u32 %s203_s29, 4  ;;  %p1168_p11 = pnand %p855_p2, %p60_p13  ;;  %s1172_s30 = int_to_ptr.vmem [resolvable:$true] %s210_s30 }
  0x2a   : > { %s1174_s8 = scalar_lea.sflag [#allocation5], %s199_s16  ;;  %s940_s9 = scalar_lea.hbm %s1166_s28, 256 }
  0x2b   : > { %p941_p5 = scmp.ne.s32.totalorder %s1166_s28, %s940_s9  ;;  %p942_p7 = pneg %p1168_p11 }
  0x2c   : > { %s945_s12 = scalar_lea.hbm %s1312_s1, 512  ;;  %p946_p10 = scmp.lt.s32.totalorder %s1166_s28, %s1312_s1 }
  0x2d   : > { %p943_p9 = pnand %p942_p7, %p941_p5  ;;  %p947_p2 = scmp.lt.s32.totalorder %s945_s12, %s940_s9 }
  0x2f   : > { %p944_p12 = pneg %p943_p9  ;;  %p948_p13 = por %p947_p2, %p946_p10 }
  0x31   : > { %p949_p0 = pnand %p948_p13, %p944_p12 }
  0x33   : > { %952 = shalt.err (!%p949_p0)
}
  0x34   : > { %s953_s16 = scalar_lea.vmem %s1172_s30, 256  ;;  %s1041_s18 = smov [#allocation4]  }
  0x35   : > { %p954_p1 = scmp.ne.s32.totalorder %s1172_s30, %s953_s16  ;;  %s958_s19 = sshll.u32 %s1041_s18, 4  ;;  %s959_s19 = int_to_ptr.vmem [resolvable:$false] %s958_s19 }
  0x36   : > { %s960_s24 = scalar_lea.vmem %s959_s19, 512  ;;  %p961_p9 = scmp.lt.s32.totalorder %s1172_s30, %s959_s19 }
  0x37   : > { %p956_p6 = pnand %p954_p1, %p942_p7  ;;  %p962_p3 = scmp.lt.s32.totalorder %s960_s24, %s953_s16 }
  0x39   : > { %p957_p5 = pneg %p956_p6  ;;  %p963_p4 = por %p962_p3, %p961_p9 }
  0x3b   : > { %p964_p8 = pnand %p963_p4, %p957_p5 }
  0x3d   : > { %967 = shalt.err (!%p964_p8)
}
  0x3e   : > { %s1042_s29 = smov 128   ;;  %s1043_s9 = smov 8  }
  0x3f   : > { %849 = dma.hbm_to_vmem [thread:$0]  (!%p1168_p11), %s1166_s28, 256, %s1172_s30, %s1174_s8, %s1042_s29, %s1042_s29, %s1043_s9  }
  0x40   : > { %p1328_p1 = scmp.ne.s32.totalorder %s1323_s27, 0 }
  0x41   : > { %s1198_s10 = sand.u32 (!%p1328_p1), 1, %s1028_s21   ;;  %p1329_p4 = scmp.ne.s32.totalorder (!%p1328_p1), %s1321_s25, 0 }
  0x42   : > { %222 = sbr.rel (%p1328_p1) target bundleno = 361 (0x169), region = 40  ;;  %s724_s11 = sshll.u32 (!%p1328_p1), %s1198_s10, 4 }
  0x43   : > { %s225_s12 = scalar_lea.sflag (!%p1328_p1), [#allocation5], %s1198_s10  ;;  %s1202_s13 = scalar_lea.vmem (!%p1328_p1), [#allocation4], %s724_s11 }
  0x47   : > { %1011 = dma.done.wait (%p1329_p4), %s225_s12, 256  }
  0x48   : > { %1013 = vsyncadd (%p1329_p4), %s225_s12, 4294967040  ;;  %p1330_p6 = scmp.eq.s32.totalorder %s1103_s0, 0 }
  0x4a   : > { %1015 = dma.done.wait (%p1330_p6), [#allocation8], 1536   ;;  %p1331_p8 = pmov %p1330_p6 }
  0x4b   : > { %v1044_v0 = vmov 0.0   ;;  %vm1045_vm0 = vmmov 0   ;;  %s260_s25 = sld [smem:[#allocation3]]  ;;  %vm273_vm1 = vsmask.f32 256  ;;  %v899_v1 = vld [vmem:[#allocation7 + $0x38] sm:$0xff]  }
  0x4c   : > { %1017 = vsyncadd (%p1331_p8), [#allocation8], 4294965760  ;;  %782 = vmatprep.subr.bf16.mxu0 %v1044_v0  ;;  %794 = vmatprep.subr.bf16.mxu1 %v1044_v0  ;;  %vm278_vm2 = vsmask.f32 7938  ;;  %v900_v2 = vld [vmem:[#allocation7 + $0x18] sm:$0xff]   ;;  %vm272_vm3 = vcmask 516096  }
  0x4d   : > { %790 = vmatprep.mubr.msk.bf16.mxu0 %vm1045_vm0, %v1044_v0  ;;  %802 = vmatprep.mubr.msk.bf16.mxu1 %vm1045_vm0, %v1044_v0  ;;  %v901_v3 = vld [vmem:[#allocation7 + $0x30] sm:$0xff]   ;;  %vm1221_vm4 = vmand %vm272_vm3, %vm273_vm1  ;;  %v903_v7 = vld [vmem:[#allocation7 + $0x28] sm:$0xff]   ;;  %vm311_vm8 = vcmask 519168   ;;  %vm289_vm9 = vsmask.f32 4368  ;;  %vm386_vm12 = vcmask 523264  }
  0x4e   : > { %783 = vmatpush3.bf16.msra.mxu0 %v899_v1  ;;  %795 = vmatpush3.bf16.msra.mxu1 %v900_v2  ;;  %v902_v4 = vld [vmem:[#allocation7 + $0x10] sm:$0xff]   ;;  %vm1226_vm5 = vmand %vm272_vm3, %vm278_vm2  ;;  %v904_v9 = vld [vmem:[#allocation7 + $0x8] sm:$0xff]   ;;  %vm349_vm13 = vsmask.f32 7424  ;;  %vm511_vm14 = vcmask 1046528   ;;  %s726_s8 = sshll.u32 %s1198_s10, 3 }
  0x4f   : > { %784 = vmatprep.subr.bf16.mxu0 %v1044_v0  ;;  %796 = vmatprep.subr.bf16.mxu1 %v1044_v0  ;;  %v261_v10 = vld [vmem:[%s1202_s13] sm:$0xff]  ;;  %v262_v11 = vld [vmem:[%s1202_s13 + $0x8] sm:$0xff]  ;;  %vm312_vm10 = vmand %vm311_vm8, %vm278_vm2  ;;  %s761_s17 = sshll.u32 %s1103_s0, 7  ;;  %s258_s16 = scalar_lea.vmem [#allocation9], %s726_s8 }
  0x50   : > { %v275_v12 = vld [vmem:[#allocation2] sm:$0x1]  ;;  %v280_v16 = vld [vmem:[#allocation2 + $0x8] sm:$0x1]  ;;  %v905_v17 = vld [vmem:[#allocation7 + $0x20] sm:$0xff]   ;;  %s633_s18 = sshll.u32 %s258_s16, 4  ;;  %s1266_s29 = scalar_lea.hbm %s1316_s5, %s761_s17  ;;  %s1268_s18 = int_to_ptr.vmem [resolvable:$true] %s633_s18 }
  0x51   : > { %v263_v8 = vstv %s260_s25  ;;  %v276_v15 = vsel %vm1221_vm4, 0, %v275_v12  ;;  %v281_v18 = vsel %vm1226_vm5, 0, %v280_v16  ;;  %v906_v19 = vld [vmem:[#allocation7] sm:$0xff]   ;;  %vm290_vm11 = vmor %vm273_vm1, %vm289_vm9  ;;  %v909_v2 = vld [vmem:[#allocation7 + $0x58] sm:$0xff]   ;;  %s620_s9 = scalar_lea.sflag [#allocation6], %s1198_s10  ;;  %s968_s0 = scalar_lea.vmem %s1268_s18, 128 }
  0x52   : > { %785 = vmatpush3.bf16.msra.mxu0 %v901_v3  ;;  %797 = vmatpush3.bf16.msra.mxu1 %v902_v4  ;;  %v264_v13 = vmul.f32 %v263_v8, %v261_v10  ;;  %v265_v14 = vmul.f32 %v263_v8, %v262_v11  ;;  %277 = vst [vmem:[#allocation2] sm:$0x1] %v276_v15  ;;  %282 = vst [vmem:[#allocation2 + $0x8] sm:$0x1] %v281_v18  ;;  %v910_v4 = vld [vmem:[#allocation7 + $0x50] sm:$0xff]   ;;  %v911_v6 = vld [vmem:[#allocation7 + $0x48] sm:$0xff]   ;;  %p969_p3 = scmp.ne.s32.totalorder %s1268_s18, %s968_s0 }
  0x53   : > { %786 = vmatprep.subr.bf16.mxu0 %v1044_v0  ;;  %798 = vmatprep.subr.bf16.mxu1 %v1044_v0  ;;  %v912_v8 = vld [vmem:[#allocation7 + $0x40] sm:$0xff]   ;;  %p1336_p11 = scmp.ne.s32.totalorder %s1326_s15, 0  ;;  %s1046_s11 = smov [#allocation9]  }
  0x54   : > { %v818_v20 = vand.u32 2147483647, %v264_v13  ;;  %v820_v21 = vcvt.f32.s32 %v264_v13  ;;  %v823_v22 = vand.u32 2147483648, %v264_v13  ;;  %v828_v23 = vcvt.f32.s32 %v265_v14  ;;  %s972_s12 = sshll.u32 %s1046_s11, 4  ;;  %s973_s12 = int_to_ptr.vmem [resolvable:$false] %s972_s12 }
  0x55   : > { %v826_v25 = vand.u32 2147483647, %v265_v14  ;;  %v831_v27 = vand.u32 2147483648, %v265_v14  ;;  %p970_p7 = pnand %p969_p3, %p1336_p11  ;;  %s974_s13 = scalar_lea.vmem %s973_s12, 256 }
  0x56   : > { %787 = vmatpush3.bf16.msra.mxu0 %v903_v7  ;;  %799 = vmatpush3.bf16.msra.mxu1 %v904_v9  ;;  %v821_v24 = vcvt.s32.f32 %v820_v21  ;;  %v829_v26 = vcvt.s32.f32 %v828_v23  ;;  %vm819_vm6 = vcmp.lt.f32.partialorder %v818_v20, 8388608.0  ;;  %v748_v23 = vld [vmem:[%s1315_s4] ss:$0 sm:$0xff]  ;;  %p975_p10 = scmp.lt.s32.totalorder %s1268_s18, %s973_s12  ;;  %p976_p2 = scmp.lt.s32.totalorder %s974_s13, %s968_s0 }
  0x57   : > { %788 = vmatprep.subr.bf16.mxu0 %v1044_v0  ;;  %800 = vmatprep.subr.bf16.mxu1 %v1044_v0  ;;  %vm827_vm7 = vcmp.lt.f32.partialorder %v826_v25, 8388608.0  ;;  %p971_p12 = pneg %p970_p7 }
  0x58   : > { %v822_v28 = vand.u32 2147483647, %v821_v24  ;;  %v830_v29 = vand.u32 2147483647, %v829_v26  ;;  %p977_p13 = por %p976_p2, %p975_p10 }
  0x59   : > { %v313_v46 = vld [vmem:[#allocation2] sm:$0xf]  ;;  %v318_v49 = vld [vmem:[#allocation2 + $0x8] sm:$0x1] }
  0x5a   : > { %789 = vmatpush3.bf16.msra.mxu0 %v905_v17  ;;  %801 = vmatpush3.bf16.msra.mxu1 %v906_v19  ;;  %v824_v30 = vor.u32 %v823_v22, %v822_v28  ;;  %v832_v31 = vor.u32 %v831_v27, %v830_v29  ;;  %p978_p0 = pnand %p977_p13, %p971_p12 }
  0x5b   : > { %806 = vmatprep.subr.bf16.mxu0 %v1044_v0 }
  0x5c   : > { %v825_v32 = vsel %vm819_vm6, %v824_v30, %v264_v13  ;;  %v833_v33 = vsel %vm827_vm7, %v832_v31, %v265_v14 }
  0x5d   : > { %v268_v34 = vmax.f32 %v825_v32, -8.0  ;;  %v269_v35 = vmax.f32 %v833_v33, -8.0 }
  0x5f   : > { %v270_v36 = vmin.f32 %v268_v34, 7.0  ;;  %v271_v37 = vmin.f32 %v269_v35, 7.0 }
  0x61   : > { %v757_v38 = vpack.c.bf16 %v270_v36, %v270_v36  ;;  %v758_v39 = vpack.c.bf16 %v271_v37, %v271_v37 }
  0x63   : > { %v292_v40 = vshrl.u32 %v757_v38, 16  ;;  %v295_v41 = vshll.u32 %v757_v38, 16  ;;  %v300_v42 = vshrl.u32 %v758_v39, 16  ;;  %v303_v43 = vshll.u32 %v758_v39, 16 }
  0x65   : > { %v294_v44 = vrot.slane %v292_v40, 7  ;;  %v302_v45 = vrot.slane %v300_v42, 7 }
  0x67   : > { %v297_v47 = vor.u32 %v295_v41, %v294_v44  ;;  %v298_v48 = vrot.slane %v294_v44, 4  ;;  %v305_v50 = vor.u32 %v303_v43, %v302_v45  ;;  %v307_v51 = vrot.slane %v302_v45, 4 }
  0x69   : > { %v314_v52 = vsel %vm312_vm10, %v297_v47, %v313_v46  ;;  %v306_v53 = vsel %vm290_vm11, %v298_v48, %v305_v50  ;;  %v319_v54 = vsel %vm1221_vm4, %v307_v51, %v318_v49 }
  0x6a   : > { %315 = vst [vmem:[#allocation2] sm:$0xf] %v314_v52  ;;  %317 = vst.msk [vmem:[#allocation2 + $0x4] sm:$0xf] %vm311_vm8, %v306_v53 }
  0x6b   : > { %320 = vst [vmem:[#allocation2 + $0x8] sm:$0x1] %v319_v54 }
  0x71   : > { %v321_v55 = vld [vmem:[#allocation2] sm:$0xf]  ;;  %v322_v56 = vld [vmem:[#allocation2 + $0x4] sm:$0xf] }
  0x72   : > { %v729_v57 = vcombine.low %v321_v55, %v322_v56  ;;  %v908_v58 = vld [vmem:[#allocation2 + $0x8] ss:$0 sps:$4 sm:$0x11]   ;;  %v498_v5 = vld [vmem:[#allocation2] sm:$0xe] }
  0x73   : > { %v358_v61 = vshll.u32 %v908_v58, 16  ;;  %v741_v7 = vcombine.low %v498_v5, %v322_v56  ;;  %v513_v10 = vrot.slane %v908_v58, 1 }
  0x74   : > { %v351_v59 = vshrl.u32 %v729_v57, 16  ;;  %v353_v60 = vshll.u32 %v729_v57, 16  ;;  %803 = vmatmul.mubr.msk.bf16.vlgmr.msra.gmra.mxu1 %vm386_vm12, %v729_v57 }
  0x75   : > { %v360_v63 = vrot.slane %v358_v61, 1  ;;  %v512_v9 = vrot.slane %v741_v7, 1 }
  0x76   : > { %v355_v62 = vrot.slane %v353_v60, 1 }
  0x77   : > { %v514_v11 = vsel %vm511_vm14, %v512_v9, %v513_v10 }
  0x78   : > { %v356_v1 = vor.u32 %v355_v62, %v351_v59 }
  0x7a   : > { %v361_v3 = vsel %vm349_vm13, %v356_v1, %v360_v63 }
  0x7b   : > { %791 = vmatmul.mubr.msk.bf16.vlgmr.msra.gmra.mxu0 %vm386_vm12, %v361_v3 }
  0x7c   : > { %807 = vmatpush3.bf16.msra.mxu0 %v909_v2  ;;  %814 = vmatprep.mubr.msk.bf16.mxu0 %vm1045_vm0, %v1044_v0 }
  0x7d   : > { %808 = vmatprep.subr.bf16.mxu0 %v1044_v0 }
  0x80   : > { %809 = vmatpush3.bf16.msra.mxu0 %v910_v4 }
  0x81   : > { %810 = vmatprep.subr.bf16.mxu0 %v1044_v0 }
  0x84   : > { %811 = vmatpush3.bf16.msra.mxu0 %v911_v6 }
  0x85   : > { %812 = vmatprep.subr.bf16.mxu0 %v1044_v0  ;;  %v747_v0 = vld [vmem:[%s1314_s3] ss:$0 sm:$0xff] }
  0x88   : > { %813 = vmatpush3.bf16.msra.mxu0 %v912_v8 }
  0x8b   : > { %815 = vmatmul.mubr.msk.bf16.vlgmr.msra.gmra.mxu0 %vm386_vm12, %v514_v11 }
 0x134   : > { %v491_v12 = vpop.f32.mrf.mxu1 }
 0x136   : > { %v804_v13 = vpop.f32.mrf.mxu1 }
 0x138   : > { %v494_v14 = vpop.f32.mrf.mxu1 }
 0x13a   : > { %v805_v15 = vpop.f32.mrf.mxu1 }
 0x13b   : > { %v424_v16 = vpop.f32.mrf.mxu0 }
 0x13c   : > { %v492_v20 = vadd.f32 %v491_v12, %v424_v16 }
 0x13d   : > { %v792_v17 = vpop.f32.mrf.mxu0 }
 0x13f   : > { %v427_v18 = vpop.f32.mrf.mxu0 }
 0x140   : > { %v495_v25 = vadd.f32 %v494_v14, %v427_v18 }
 0x141   : > { %v793_v19 = vpop.f32.mrf.mxu0 }
 0x14b   : > { %v576_v21 = vpop.f32.mrf.mxu0 }
 0x14c   : > { %v583_v22 = vadd.f32 %v576_v21, %v492_v20 }
 0x14d   : > { %v816_v24 = vpop.f32.mrf.mxu0 }
 0x14e   : > { %v592_v26 = vmul.f32 %v747_v0, %v583_v22 }
 0x14f   : > { %v579_v27 = vpop.f32.mrf.mxu0 }
 0x150   : > { %v601_v28 = vadd.f32 %v748_v23, %v592_v26  ;;  %v584_v29 = vadd.f32 %v579_v27, %v495_v25 }
 0x151   : > { %v817_v30 = vpop.f32.mrf.mxu0 }
 0x152   : > { %v593_v31 = vmul.f32 %v747_v0, %v584_v29  ;;  %v605_v32 = vmul.f32 0.01, %v601_v28  ;;  %vm603_vm15 = vcmp.ge.f32.partialorder %v601_v28, 0.0 }
 0x154   : > { %v602_v33 = vadd.f32 %v748_v23, %v593_v31  ;;  %v607_v35 = vsel %vm603_vm15, %v601_v28, %v605_v32 }
 0x156   : > { %vm604_vm0 = vcmp.ge.f32.partialorder %v602_v33, 0.0  ;;  %v606_v34 = vmul.f32 0.01, %v602_v33 }
 0x158   : > { %v608_v36 = vsel %vm604_vm0, %v602_v33, %v606_v34 }
 0x159   : > { %v765_v37 = vpack.c.bf16 %v608_v36, %v607_v35 }
 0x15b   : > { %766 = vst [vmem:[%s258_s16] sm:$0xff] %v765_v37  }
 0x15c   : > { %981 = shalt.err (!%p978_p0)
}
 0x15d   : > { %s982_s25 = scalar_lea.hbm %s1266_s29, 128  ;;  %s986_s30 = scalar_lea.hbm %s1316_s5, 256 }
 0x15e   : > { %p983_p5 = scmp.ne.s32.totalorder %s1266_s29, %s982_s25  ;;  %p987_p4 = scmp.lt.s32.totalorder %s1266_s29, %s1316_s5 }
 0x15f   : > { %p988_p6 = scmp.lt.s32.totalorder %s986_s30, %s982_s25 }
 0x160   : > { %p984_p9 = pnand %p983_p5, %p1336_p11 }
 0x161   : > { %p989_p8 = por %p988_p6, %p987_p4 }
 0x162   : > { %p985_p1 = pneg %p984_p9 }
 0x164   : > { %p990_p3 = pnand %p989_p8, %p985_p1 }
 0x166   : > { %993 = shalt.err (!%p990_p3)
}
 0x167   : > { %s1047_s17 = smov 64   ;;  %s1048_s16 = smov 4  }
 0x168   : > { %840 = dma.vmem_to_hbm [thread:$0]  (%p1336_p11), %s1268_s18, 128, %s1266_s29, %s620_s9, %s1047_s17, %s1047_s17, %s1048_s16  }
 0x169 PF: > { %s648_s19 = sand.u32 1, %s1024_s20   ;;  %p1337_p7 = scmp.ne.s32.totalorder %s1322_s26, 0 }
 0x16a   : > { %p1338_p12 = scmp.ge.s32.totalorder %s1036_s23, 2  ;;  %s649_s24 = scalar_lea.sflag [#allocation6], %s648_s19 }
 0x16c   : > { %p851_p10 = pnand %p1338_p12, %p1337_p7 }
 0x16e   : > { %p852_p2 = pneg %p851_p10 }
 0x170   : > { %1019 = dma.done.wait (%p852_p2), %s649_s24, 128  }
 0x171   : > { %1021 = vsyncadd (%p852_p2), %s649_s24, 4294967168  ;;  %p20_p13 = scmp.ge.s32.totalorder %s1136_s6, 4   ;;  %s1339_s20 = smov %s1028_s21 }
 0x172   : > { %s1340_s21 = smov %s1032_s22  ;;  %s1341_s22 = smov %s1153_s14 }
 0x173   : > { %s1342_s23 = smov %s1136_s6  ;;  %22 = sbr.rel (!%p20_p13) target bundleno = 8 (0x8), region = 91 }
 0x178   :  { %654 = vsyncpa [#allocation5], 1 }
 0x179   :  { %656 = vsyncpa [#allocation5 + $0x1], 1 }
 0x17a   :  { %657 = vsyncpa [#allocation8], 1 }
 0x17b   :  { %658 = vsyncpa [#allocation6], 1 }
 0x17c   :  { %660 = vsyncpa [#allocation6 + $0x1], 1 }

</bundles_post_ra>
